<compile_context>
chip_gen: v7x
topology: tpu7x:2x2x1
jax: 0.10.0
libtpu: 0.0.40
codegen_flags: <defaults>
</compile_context>

<pallas_src>
import functools

import jax
import jax.numpy as jnp
from jax.experimental import pallas as pl
from jax.experimental.pallas import tpu as pltpu


def _round_up(x, m):
    return ((x + m - 1) // m) * m


def _pick_tile(B, tb):
    """Batch-tile (sublane) size: big DMAs, but >= ~8 grid steps for large B."""
    tb = max(32, 32 * (tb // 32))
    if B <= tb:
        return B                      # single tile; full sublane extent is always legal
    cap = _round_up(pl.cdiv(B, 8), 32)  # keep >= ~8 steps (v7x two-TC sharding + pipeline)
    return max(256, min(tb, cap))


def mfbias_kernel(g_ref, u_ref, v_ref, b_ref, out_ref):
    """Fused  <p_u, q_i> + b_u + b_i + mu  for one (TB, D) batch tile.

    g_ref  : (1,)     f32 in SMEM  (global bias mu)
    u_ref  : (TB, D)  bf16/f32 user latent factors
    v_ref  : (TB, D)  bf16/f32 item latent factors
    b_ref  : (TB, 2)  f32 packed [user_bias, item_bias]
    out_ref: (TB, 1)  f32 predictions
    """
    TB, D = u_ref.shape
    mu = g_ref[0]
    # Row-chunk the reduction so live values stay ~8 vregs/operand (no spill cliff).
    rows_per_chunk = min(TB, max(8, ((8192 // max(D, 1)) // 8) * 8))
    for start in range(0, TB, rows_per_chunk):
        rows = min(rows_per_chunk, TB - start)
        sl = slice(start, start + rows)
        u = u_ref[sl, :].astype(jnp.float32)          # upcast; f32 math everywhere
        v = v_ref[sl, :].astype(jnp.float32)
        mf = jnp.sum(u * v, axis=1, keepdims=True)    # (rows, 1) lane reduce (XLU)
        b = b_ref[sl, :]
        out_ref[sl, :] = mf + b[:, 0:1] + b[:, 1:2] + mu


def mfbias_forward(user_indices, item_indices, params, *, tb=8192):
    """Gather rows (single fused XLA pass), then run the fused bias+dot kernel."""
    u = params["user_emb"][user_indices]             # (B, D)  bf16 gather, one HBM pass
    v = params["item_emb"][item_indices]             # (B, D)
    bu = params["user_bias"][user_indices, 0]        # (B,)    f32
    bi = params["item_bias"][item_indices, 0]        # (B,)    f32
    g = params["global_bias"]                        # (1,)    f32
    bias = jnp.stack([bu, bi], axis=1)               # (B, 2)  packed -> one DMA/step

    B, D = u.shape
    tbl = _pick_tile(B, tb)
    grid = (pl.cdiv(B, tbl),)                        # partial last block handled by Pallas

    itemsize = jnp.dtype(u.dtype).itemsize
    cost = pl.CostEstimate(
        flops=2 * B * D + 3 * B,
        transcendentals=0,
        bytes_accessed=2 * B * D * itemsize + B * 2 * 4 + B * 4,
    )

    out = pl.pallas_call(
        mfbias_kernel,
        out_shape=jax.ShapeDtypeStruct((B, 1), jnp.float32),
        grid=grid,
        in_specs=[
            pl.BlockSpec(memory_space=pltpu.MemorySpace.SMEM),  # global bias scalar
            pl.BlockSpec((tbl, D), lambda i: (i, 0)),           # user factors
            pl.BlockSpec((tbl, D), lambda i: (i, 0)),           # item factors
            pl.BlockSpec((tbl, 2), lambda i: (i, 0)),           # packed biases
        ],
        out_specs=pl.BlockSpec((tbl, 1), lambda i: (i, 0)),
        compiler_params=pltpu.CompilerParams(
            dimension_semantics=("parallel",),
        ),
        cost_estimate=cost,
    )(g, u, v, bias)
    return out[:, 0]                                  # (B,)


def init_params(key, num_users, num_items, embedding_dim, factor_dtype=jnp.bfloat16):
    """Deterministic parameter init mirroring MFBias._init_weights.

    Latent factors are stored in bf16 (streamed + upcast in-kernel); biases in f32.
    """
    ku, ki = jax.random.split(key)
    user_emb = 0.01 * jax.random.normal(ku, (num_users, embedding_dim), jnp.float32)
    item_emb = 0.01 * jax.random.normal(ki, (num_items, embedding_dim), jnp.float32)
    return {
        "user_emb": user_emb.astype(factor_dtype),
        "item_emb": item_emb.astype(factor_dtype),
        "user_bias": jnp.zeros((num_users, 1), jnp.float32),
        "item_bias": jnp.zeros((num_items, 1), jnp.float32),
        "global_bias": jnp.zeros((1,), jnp.float32),
    }


def mfbias_reference(user_indices, item_indices, params):
    """Pure-JAX reference matching the PyTorch forward (dropout=0.0 -> identity)."""
    u = params["user_emb"][user_indices].astype(jnp.float32)
    v = params["item_emb"][item_indices].astype(jnp.float32)
    bu = params["user_bias"][user_indices, 0]
    bi = params["item_bias"][item_indices, 0]
    g = params["global_bias"][0]
    return g + bu + bi + jnp.sum(u * v, axis=1)


if __name__ == "__main__":
    num_users, num_items, embedding_dim = 50, 40, 32
    batch = 8

    key = jax.random.PRNGKey(0)
    kp, ku, ki = jax.random.split(key, 3)
    params = init_params(kp, num_users, num_items, embedding_dim)

    user_indices = jax.random.randint(ku, (batch,), 0, num_users, dtype=jnp.int32)
    item_indices = jax.random.randint(ki, (batch,), 0, num_items, dtype=jnp.int32)

    fwd = jax.jit(functools.partial(mfbias_forward, tb=8192))
    pred = jax.block_until_ready(fwd(user_indices, item_indices, params))
    ref = mfbias_reference(user_indices, item_indices, params)
    assert pred.shape == (batch,)
    assert jnp.allclose(pred, ref, atol=1e-6, rtol=1e-5), (pred, ref)

    # Ragged, larger batch exercising partial last blocks and a multi-step parallel grid.
    batch2 = 1000
    ku2, ki2 = jax.random.split(jax.random.PRNGKey(1))
    u_idx2 = jax.random.randint(ku2, (batch2,), 0, num_users, dtype=jnp.int32)
    i_idx2 = jax.random.randint(ki2, (batch2,), 0, num_items, dtype=jnp.int32)
    fwd2 = jax.jit(functools.partial(mfbias_forward, tb=256))
    pred2 = jax.block_until_ready(fwd2(u_idx2, i_idx2, params))
    ref2 = mfbias_reference(u_idx2, i_idx2, params)
    assert pred2.shape == (batch2,)
    assert jnp.allclose(pred2, ref2, atol=1e-6, rtol=1e-5)

    print("KERNEL_OK")
</pallas_src>

<mosaic_0001>
module attributes {stable_mosaic.version = 11 : i64} {
  func.func @mfbias_kernel(%arg0: i32, %arg1: memref<1xf32, #tpu.memory_space<smem>>, %arg2: memref<8x32xbf16, #tpu.memory_space<vmem>>, %arg3: memref<8x32xbf16, #tpu.memory_space<vmem>>, %arg4: memref<8x2xf32, #tpu.memory_space<vmem>>, %arg5: memref<8x1xf32, #tpu.memory_space<vmem>>) attributes {dimension_semantics = [#tpu.dimension_semantics<parallel>], iteration_bounds = array<i64: 1>, scalar_prefetch = 0 : i64, scratch_operands = 0 : i64, tpu.core_type = #tpu.core_type<tc>, window_params = [{transform_indices = @transform_0, window_bounds = array<i64: 1>}, {transform_indices = @transform_1, window_bounds = array<i64: 8, 32>}, {transform_indices = @transform_2, window_bounds = array<i64: 8, 32>}, {transform_indices = @transform_3, window_bounds = array<i64: 8, 2>}, {transform_indices = @transform_4, window_bounds = array<i64: 8, 1>}]} {
    %c0 = arith.constant 0 : index
    %0 = memref.load %arg1[%c0] : memref<1xf32, #tpu.memory_space<smem>>
    %c0_0 = arith.constant 0 : index
    %c0_1 = arith.constant 0 : index
    %1 = vector.load %arg2[%c0_0, %c0_1] : memref<8x32xbf16, #tpu.memory_space<vmem>>, vector<8x32xbf16>
    %2 = arith.extf %1 : vector<8x32xbf16> to vector<8x32xf32>
    %c0_2 = arith.constant 0 : index
    %c0_3 = arith.constant 0 : index
    %3 = vector.load %arg3[%c0_2, %c0_3] : memref<8x32xbf16, #tpu.memory_space<vmem>>, vector<8x32xbf16>
    %4 = arith.extf %3 : vector<8x32xbf16> to vector<8x32xf32>
    %5 = arith.mulf %2, %4 : vector<8x32xf32>
    %cst = arith.constant dense<0.000000e+00> : vector<8xf32>
    %6 = vector.multi_reduction <add>, %5, %cst [1] : vector<8x32xf32> to vector<8xf32>
    %7 = vector.shape_cast %6 : vector<8xf32> to vector<8x1xf32>
    %c0_4 = arith.constant 0 : index
    %c0_5 = arith.constant 0 : index
    %8 = vector.load %arg4[%c0_4, %c0_5] : memref<8x2xf32, #tpu.memory_space<vmem>>, vector<8x2xf32>
    %9 = vector.extract_strided_slice %8 {offsets = [0, 0], sizes = [8, 1], strides = [1, 1]} : vector<8x2xf32> to vector<8x1xf32>
    %10 = arith.addf %7, %9 : vector<8x1xf32>
    %11 = vector.extract_strided_slice %8 {offsets = [0, 1], sizes = [8, 1], strides = [1, 1]} : vector<8x2xf32> to vector<8x1xf32>
    %12 = arith.addf %10, %11 : vector<8x1xf32>
    %13 = vector.broadcast %0 : f32 to vector<8x1xf32>
    %14 = arith.addf %12, %13 : vector<8x1xf32>
    %c0_6 = arith.constant 0 : index
    %c0_7 = arith.constant 0 : index
    %15 = vector.load %arg5[%c0_6, %c0_7] : memref<8x1xf32, #tpu.memory_space<vmem>>, vector<8x1xf32>
    tpu.vector_store %arg5[%c0_6, %c0_7], %14 {strides = array<i32>} : memref<8x1xf32, #tpu.memory_space<vmem>>, vector<8x1xf32>,
    return
  }
  func.func @transform_0(%arg0: i32) -> i32 {
    %c0_i32 = arith.constant 0 : i32
    %c0_i32_0 = arith.constant 0 : i32
    return %c0_i32 : i32
  }
  func.func @transform_1(%arg0: i32) -> (i32, i32) {
    %c0_i32 = arith.constant 0 : i32
    %c0_i32_0 = arith.constant 0 : i32
    return %arg0, %c0_i32 : i32, i32
  }
  func.func @transform_2(%arg0: i32) -> (i32, i32) {
    %c0_i32 = arith.constant 0 : i32
    %c0_i32_0 = arith.constant 0 : i32
    return %arg0, %c0_i32 : i32, i32
  }
  func.func @transform_3(%arg0: i32) -> (i32, i32) {
    %c0_i32 = arith.constant 0 : i32
    %c0_i32_0 = arith.constant 0 : i32
    return %arg0, %c0_i32 : i32, i32
  }
  func.func @transform_4(%arg0: i32) -> (i32, i32) {
    %c0_i32 = arith.constant 0 : i32
    %c0_i32_0 = arith.constant 0 : i32
    return %arg0, %c0_i32 : i32, i32
  }
}

</mosaic_0001>

<bundles_post_ra>
// kernel: mfbias_forward.1
= control target key start
LH: loop header
LB: loop body
LE: loop exit
PB: predicated region body
PF: predicated region fallthrough
CT: control target
= control target key end

     0   :  { %vm24_vm0 = vcmask 261120   ;;  %s44_s21 = smov 127   ;;  %vm37_vm1 = vcmask 7168   ;;  %s85_s1 = inlined_call_operand.vmem [shape: bf16[8,32], index: 1, kind: input, shape index: {}]   ;;  %s86_s2 = inlined_call_operand.vmem [shape: bf16[8,32], index: 2, kind: input, shape index: {}]   ;;  %s87_s3 = inlined_call_operand.vmem [shape: f32[8,2], index: 3, kind: input, shape index: {}]   ;;  %s88_s0 = inlined_call_operand.<no memory space> [shape: f32[1], index: 0, kind: input, shape index: {}]   ;;  %s89_s4 = inlined_call_operand.vmem [shape: f32[8,1], index: 4, kind: output, shape index: {}]  }
   0x1   :  { %v19_v0 = vld [vmem:[%s85_s1] sm:$0xf]  ;;  %v35_v10 = vstv %s88_s0 }
   0x2   :  { %v21_v1 = vld [vmem:[%s86_s2] sm:$0xf]  ;;  %v20_v2 = vunpack.c.l.bf16 %v19_v0 }
   0x3   :  { %v22_v3 = vunpack.c.l.bf16 %v21_v1  ;;  %v28_v6 = vld [vmem:[%s87_s3] sm:$0xff] }
   0x5   :  { %v23_v4 = vmul.f32 %v22_v3, %v20_v2 }
   0x7   :  { %v25_v5 = vsel %vm24_vm0, %v23_v4, 0.0 }
   0x8   :  { %26 = vadd.xlane.f32.xlu0 %v25_v5 }
  0x1e   :  { %31 = vrot.lane.b32.xlu0 %v28_v6, %s44_s21 }
  0x95   :  { %v27_v7 = vpop.xlane.xlu0 %26 }
  0x96   :  { %v29_v8 = vadd.f32 %v28_v6, %v27_v7 }
  0x99   :  { %v32_v9 = vpop.permute.xlu0 %31 }
  0x9a   :  { %v34_v11 = vadd.f32 %v32_v9, %v29_v8 }
  0x9c   :  { %v36_v12 = vadd.f32 %v35_v10, %v34_v11 }
  0x9e   :  { %38 = vst.msk [vmem:[%s89_s4] sm:$0xff] %vm37_vm1, %v36_v12 }

</bundles_post_ra>
